<compile_context>
chip_gen: v6e
topology: v6e:2x2x1
jax: 0.10.0
libtpu: 0.0.40
codegen_flags: <defaults>
</compile_context>

<pallas_src>
import jax
import jax.numpy as jnp
from jax import lax
from jax.experimental import pallas as pl
from jax.experimental.pallas import tpu as pltpu


def mlp_kernel(x_ref, w1_ref, b1_ref, w2_ref, b2_ref, w3_ref, b3_ref, o_ref):
    # x tile is batch-major (tb, 3); everything downstream is feature-major so
    # the batch sits on the 128-lane axis. Matmuls hit the MXU, bias/ReLU the VPU.
    x = x_ref[...]                                                     # (tb, 3)

    # Contract w1's "in" axis (1) with x's feature axis (1) -> (32, tb).
    h1 = lax.dot_general(w1_ref[...], x, (((1,), (1,)), ((), ())),
                         preferred_element_type=jnp.float32)
    h1 = jnp.maximum(h1 + b1_ref[...], 0.0)                           # (32, tb)

    h2 = jnp.dot(w2_ref[...], h1, preferred_element_type=jnp.float32)
    h2 = jnp.maximum(h2 + b2_ref[...], 0.0)                           # (16, tb)

    h3 = jnp.dot(w3_ref[...], h2, preferred_element_type=jnp.float32)
    o_ref[...] = (h3 + b3_ref[...]).astype(o_ref.dtype)               # (2, tb)


def simple_nn_forward(x, params, block_b=8192):
    """x: (B, 3) float32. params: PyTorch-layout weights W(out, in), b(out,)."""
    w1, w2, w3 = params["w1"], params["w2"], params["w3"]
    b1 = params["b1"].reshape(-1, 1)   # (32, 1) -> broadcasts across lanes
    b2 = params["b2"].reshape(-1, 1)   # (16, 1)
    b3 = params["b3"].reshape(-1, 1)   # (2, 1)

    B = x.shape[0]

    # Robustness: lane tile must be a multiple of 128.
    block_b = max(128, (block_b // 128) * 128)
    # Smallest legal lane tile covering B (single grid step for tiny batches).
    tb = min(block_b, pl.cdiv(B, 128) * 128)
    # If the batch spans more than one tile, aim for grid length >= 2 so the
    # "parallel" batch axis can be sharded across both TensorCores on v7x.
    if B > tb:
        tb = min(block_b, 128 * pl.cdiv(B, 256))
    grid = (pl.cdiv(B, tb),)

    const = lambda shape: pl.BlockSpec(shape, lambda i: (0, 0))

    param_bytes = 4 * (w1.size + w2.size + w3.size + b1.size + b2.size + b3.size)
    cost = pl.CostEstimate(
        flops=2 * B * (3 * 32 + 32 * 16 + 16 * 2),
        transcendentals=0,
        bytes_accessed=B * (3 + 2) * 4 + param_bytes,
    )

    out_t = pl.pallas_call(
        mlp_kernel,
        out_shape=jax.ShapeDtypeStruct((2, B), jnp.float32),
        grid=grid,
        in_specs=[
            pl.BlockSpec((tb, 3), lambda i: (i, 0)),      # x tile, pipelined
            const(w1.shape), const(b1.shape),             # resident params
            const(w2.shape), const(b2.shape),
            const(w3.shape), const(b3.shape),
        ],
        out_specs=pl.BlockSpec((2, tb), lambda i: (0, i)),  # lane-dense store
        compiler_params=pltpu.CompilerParams(
            dimension_semantics=("parallel",)),
        cost_estimate=cost,
    )(x, w1, b1, w2, b2, w3, b3)

    # Consumer wants PyTorch-shaped (B, 2); keep the cheap wrapper transpose
    # rather than a 2-lane masked store inside the kernel.
    return jnp.transpose(out_t)


def init_params(key):
    """Deterministic init mimicking PyTorch nn.Linear defaults
    (uniform(-1/sqrt(fan_in), 1/sqrt(fan_in))). PyTorch layout: W (out, in), b (out,)."""
    dims = [(3, 32), (32, 16), (16, 2)]
    params = {}
    for idx, (fan_in, fan_out) in enumerate(dims, start=1):
        key, kw, kb = jax.random.split(key, 3)
        bound = 1.0 / jnp.sqrt(jnp.float32(fan_in))
        params[f"w{idx}"] = jax.random.uniform(
            kw, (fan_out, fan_in), jnp.float32, -bound, bound)
        params[f"b{idx}"] = jax.random.uniform(
            kb, (fan_out,), jnp.float32, -bound, bound)
    return params


def reference_forward(x, params):
    h = jnp.maximum(x @ params["w1"].T + params["b1"], 0.0)
    h = jnp.maximum(h @ params["w2"].T + params["b2"], 0.0)
    return h @ params["w3"].T + params["b3"]


if __name__ == "__main__":
    key = jax.random.PRNGKey(0)
    key, kx, kx2 = jax.random.split(key, 3)
    params = init_params(key)

    # Small-shape check (single grid step, partial last block).
    batch = 8
    x = jax.random.normal(kx, (batch, 3), jnp.float32)
    out = jax.block_until_ready(simple_nn_forward(x, params))
    ref = reference_forward(x, params)
    assert out.shape == (batch, 2), out.shape
    assert jnp.allclose(out, ref, atol=1e-5, rtol=1e-5), (out, ref)

    # Multi-step grid check (non-divisible batch, grid > 1).
    batch2 = 384
    x2 = jax.random.normal(kx2, (batch2, 3), jnp.float32)
    out2 = jax.block_until_ready(simple_nn_forward(x2, params, block_b=128))
    ref2 = reference_forward(x2, params)
    assert out2.shape == (batch2, 2), out2.shape
    assert jnp.allclose(out2, ref2, atol=1e-5, rtol=1e-5)

    print("KERNEL_OK")
</pallas_src>

<mosaic_0001>
module attributes {stable_mosaic.version = 11 : i64} {
  func.func @mlp_kernel(%arg0: i32, %arg1: memref<128x3xf32, #tpu.memory_space<vmem>>, %arg2: memref<32x3xf32, #tpu.memory_space<vmem>>, %arg3: memref<32x1xf32, #tpu.memory_space<vmem>>, %arg4: memref<16x32xf32, #tpu.memory_space<vmem>>, %arg5: memref<16x1xf32, #tpu.memory_space<vmem>>, %arg6: memref<2x16xf32, #tpu.memory_space<vmem>>, %arg7: memref<2x1xf32, #tpu.memory_space<vmem>>, %arg8: memref<2x128xf32, #tpu.memory_space<vmem>>) attributes {dimension_semantics = [#tpu.dimension_semantics<parallel>], iteration_bounds = array<i64: 1>, scalar_prefetch = 0 : i64, scratch_operands = 0 : i64, tpu.core_type = #tpu.core_type<tc>, window_params = [{transform_indices = @transform_0, window_bounds = array<i64: 128, 3>}, {pipeline_mode = #tpu.pipeline_mode<synchronous>, transform_indices = @transform_1, window_bounds = array<i64: 32, 3>}, {pipeline_mode = #tpu.pipeline_mode<synchronous>, transform_indices = @transform_2, window_bounds = array<i64: 32, 1>}, {pipeline_mode = #tpu.pipeline_mode<synchronous>, transform_indices = @transform_3, window_bounds = array<i64: 16, 32>}, {pipeline_mode = #tpu.pipeline_mode<synchronous>, transform_indices = @transform_4, window_bounds = array<i64: 16, 1>}, {pipeline_mode = #tpu.pipeline_mode<synchronous>, transform_indices = @transform_5, window_bounds = array<i64: 2, 16>}, {pipeline_mode = #tpu.pipeline_mode<synchronous>, transform_indices = @transform_6, window_bounds = array<i64: 2, 1>}, {transform_indices = @transform_7, window_bounds = array<i64: 2, 128>}]} {
    %c0 = arith.constant 0 : index
    %c0_0 = arith.constant 0 : index
    %0 = vector.load %arg1[%c0, %c0_0] : memref<128x3xf32, #tpu.memory_space<vmem>>, vector<128x3xf32>
    %c0_1 = arith.constant 0 : index
    %c0_2 = arith.constant 0 : index
    %1 = vector.load %arg2[%c0_1, %c0_2] : memref<32x3xf32, #tpu.memory_space<vmem>>, vector<32x3xf32>
    %cst = arith.constant dense<0.000000e+00> : vector<32x128xf32>
    %2 = tpu.matmul %1, %0, %cst {dimension_numbers = #tpu.dot_dimension_numbers<[1], [1], [0], [0], [0, 0, 1, 0], [], []>} : vector<32x3xf32>, vector<128x3xf32>, vector<32x128xf32> -> vector<32x128xf32>
    %c0_3 = arith.constant 0 : index
    %c0_4 = arith.constant 0 : index
    %3 = vector.load %arg3[%c0_3, %c0_4] : memref<32x1xf32, #tpu.memory_space<vmem>>, vector<32x1xf32>
    %4 = vector.broadcast %3 : vector<32x1xf32> to vector<32x128xf32>
    %5 = arith.addf %2, %4 : vector<32x128xf32>
    %cst_5 = arith.constant 0.000000e+00 : f32
    %6 = vector.broadcast %cst_5 : f32 to vector<32x128xf32>
    %7 = arith.maximumf %5, %6 : vector<32x128xf32>
    %c0_6 = arith.constant 0 : index
    %c0_7 = arith.constant 0 : index
    %8 = vector.load %arg4[%c0_6, %c0_7] : memref<16x32xf32, #tpu.memory_space<vmem>>, vector<16x32xf32>
    %cst_8 = arith.constant dense<0.000000e+00> : vector<16x128xf32>
    %9 = tpu.matmul %8, %7, %cst_8 {dimension_numbers = #tpu.dot_dimension_numbers<[1], [0], [0], [1], [0, 0, 1, 1], [], []>} : vector<16x32xf32>, vector<32x128xf32>, vector<16x128xf32> -> vector<16x128xf32>
    %c0_9 = arith.constant 0 : index
    %c0_10 = arith.constant 0 : index
    %10 = vector.load %arg5[%c0_9, %c0_10] : memref<16x1xf32, #tpu.memory_space<vmem>>, vector<16x1xf32>
    %11 = vector.broadcast %10 : vector<16x1xf32> to vector<16x128xf32>
    %12 = arith.addf %9, %11 : vector<16x128xf32>
    %cst_11 = arith.constant 0.000000e+00 : f32
    %13 = vector.broadcast %cst_11 : f32 to vector<16x128xf32>
    %14 = arith.maximumf %12, %13 : vector<16x128xf32>
    %c0_12 = arith.constant 0 : index
    %c0_13 = arith.constant 0 : index
    %15 = vector.load %arg6[%c0_12, %c0_13] : memref<2x16xf32, #tpu.memory_space<vmem>>, vector<2x16xf32>
    %cst_14 = arith.constant dense<0.000000e+00> : vector<2x128xf32>
    %16 = tpu.matmul %15, %14, %cst_14 {dimension_numbers = #tpu.dot_dimension_numbers<[1], [0], [0], [1], [0, 0, 1, 1], [], []>} : vector<2x16xf32>, vector<16x128xf32>, vector<2x128xf32> -> vector<2x128xf32>
    %c0_15 = arith.constant 0 : index
    %c0_16 = arith.constant 0 : index
    %17 = vector.load %arg7[%c0_15, %c0_16] : memref<2x1xf32, #tpu.memory_space<vmem>>, vector<2x1xf32>
    %18 = vector.broadcast %17 : vector<2x1xf32> to vector<2x128xf32>
    %19 = arith.addf %16, %18 : vector<2x128xf32>
    %c0_17 = arith.constant 0 : index
    %c0_18 = arith.constant 0 : index
    %20 = vector.load %arg8[%c0_17, %c0_18] : memref<2x128xf32, #tpu.memory_space<vmem>>, vector<2x128xf32>
    tpu.vector_store %arg8[%c0_17, %c0_18], %19 {strides = array<i32>} : memref<2x128xf32, #tpu.memory_space<vmem>>, vector<2x128xf32>,
    return
  }
  func.func @transform_0(%arg0: i32) -> (i32, i32) {
    %c0_i32 = arith.constant 0 : i32
    %c0_i32_0 = arith.constant 0 : i32
    return %arg0, %c0_i32 : i32, i32
  }
  func.func @transform_1(%arg0: i32) -> (i32, i32) {
    %c0_i32 = arith.constant 0 : i32
    %c0_i32_0 = arith.constant 0 : i32
    %c0_i32_1 = arith.constant 0 : i32
    return %c0_i32, %c0_i32_0 : i32, i32
  }
  func.func @transform_2(%arg0: i32) -> (i32, i32) {
    %c0_i32 = arith.constant 0 : i32
    %c0_i32_0 = arith.constant 0 : i32
    %c0_i32_1 = arith.constant 0 : i32
    return %c0_i32, %c0_i32_0 : i32, i32
  }
  func.func @transform_3(%arg0: i32) -> (i32, i32) {
    %c0_i32 = arith.constant 0 : i32
    %c0_i32_0 = arith.constant 0 : i32
    %c0_i32_1 = arith.constant 0 : i32
    return %c0_i32, %c0_i32_0 : i32, i32
  }
  func.func @transform_4(%arg0: i32) -> (i32, i32) {
    %c0_i32 = arith.constant 0 : i32
    %c0_i32_0 = arith.constant 0 : i32
    %c0_i32_1 = arith.constant 0 : i32
    return %c0_i32, %c0_i32_0 : i32, i32
  }
  func.func @transform_5(%arg0: i32) -> (i32, i32) {
    %c0_i32 = arith.constant 0 : i32
    %c0_i32_0 = arith.constant 0 : i32
    %c0_i32_1 = arith.constant 0 : i32
    return %c0_i32, %c0_i32_0 : i32, i32
  }
  func.func @transform_6(%arg0: i32) -> (i32, i32) {
    %c0_i32 = arith.constant 0 : i32
    %c0_i32_0 = arith.constant 0 : i32
    %c0_i32_1 = arith.constant 0 : i32
    return %c0_i32, %c0_i32_0 : i32, i32
  }
  func.func @transform_7(%arg0: i32) -> (i32, i32) {
    %c0_i32 = arith.constant 0 : i32
    %c0_i32_0 = arith.constant 0 : i32
    return %c0_i32, %arg0 : i32, i32
  }
}

</mosaic_0001>

<bundles_post_ra>
// kernel: tpu_custom_call.1
= control target key start
LH: loop header
LB: loop body
LE: loop exit
PB: predicated region body
PF: predicated region fallthrough
CT: control target
= control target key end

     0   :  { %vm71_vm0 = vcmask 23552   ;;  %v551_v2 = vmov 0   ;;  %s726_s0 = inlined_call_operand.vmem [shape: f32[8,3], index: 0, kind: input, shape index: {}]   ;;  %s727_s1 = inlined_call_operand.vmem [shape: f32[32,3], index: 1, kind: input, shape index: {}]   ;;  %s728_s2 = inlined_call_operand.vmem [shape: f32[32,1], index: 2, kind: input, shape index: {}]   ;;  %s729_s3 = inlined_call_operand.vmem [shape: f32[16,32], index: 3, kind: input, shape index: {}]   ;;  %s730_s4 = inlined_call_operand.vmem [shape: f32[16,1], index: 4, kind: input, shape index: {}]   ;;  %s731_s5 = inlined_call_operand.vmem [shape: f32[2,16], index: 5, kind: input, shape index: {}]   ;;  %s732_s6 = inlined_call_operand.vmem [shape: f32[2,1], index: 6, kind: input, shape index: {}]   ;;  %s733_s7 = inlined_call_operand.hbm [shape: f32[2,8], index: 7, kind: output, shape index: {}]  }
   0x1   :  { %v42_v0 = vld [vmem:[%s726_s0 + $0x78] sm:$0xff]  ;;  %v41_v1 = vld [vmem:[%s726_s0 + $0x70] sm:$0xff]  ;;  %527 = vset.pattern.permute.xlu0 %v551_v2  ;;  %528 = vset.pattern.permute.xlu1 %v551_v2  ;;  %v40_v3 = vld [vmem:[%s726_s0 + $0x68] sm:$0xff] }
   0x2   :  { %467 = vmatprep.subr.msk.mxu0 %vm71_vm0, %v42_v0  ;;  %v43_v4 = vld [vmem:[%s727_s1] sm:$0xff]  ;;  %v50_v5 = vld [vmem:[%s728_s2 + $0x18] sm:$0xff]  ;;  %v48_v6 = vld [vmem:[%s728_s2 + $0x8] sm:$0xff] }
   0x3   :  { %468 = vmatpush3.xpose.msk.msra.mxu0 %vm71_vm0, %v42_v0  ;;  %499 = vmatprep.mubr.msk.f32.mxu0 %vm71_vm0, %v43_v4  ;;  %v39_v7 = vld [vmem:[%s726_s0 + $0x60] sm:$0xff]  ;;  %v49_v8 = vld [vmem:[%s728_s2 + $0x10] sm:$0xff] }
   0x4   :  { %469 = vmatprep.subr.msk.mxu0 %vm71_vm0, %v41_v1  ;;  %68 = vperm.xlu0 %527, %v50_v5   ;;  %v47_v9 = vld [vmem:[%s728_s2] sm:$0xff] }
   0x5   :  { %58 = vperm.xlu1 %528, %v48_v6  }
   0x7   :  { %470 = vmatpush3.xpose.msk.msra.mxu0 %vm71_vm0, %v41_v1 }
   0x8   :  { %471 = vmatprep.subr.msk.mxu0 %vm71_vm0, %v40_v3 }
   0x9   :  { %12 = vsyncpa [#allocation3], 0  ;;  %63 = vperm.xlu0 %527, %v49_v8   ;;  %v38_v10 = vld [vmem:[%s726_s0 + $0x58] sm:$0xff]  ;;  %v224_v11 = vld [vmem:[%s730_s4 + $0x8] sm:$0xff]  ;;  %53 = vperm.xlu1 %528, %v47_v9   ;;  %vm235_vm1 = vcmask 261120   ;;  %v552_v46 = vmov 0.0  }
   0xa   :  { %v223_v12 = vld [vmem:[%s730_s4] sm:$0xff]  ;;  %v37_v13 = vld [vmem:[%s726_s0 + $0x50] sm:$0xff]  ;;  %v36_v15 = vld [vmem:[%s726_s0 + $0x48] sm:$0xff]  ;;  %vm553_vm2 = vmmov 0   ;;  %vm326_vm3 = vcmask 130048  }
   0xb   :  { %472 = vmatpush3.xpose.msk.msra.mxu0 %vm71_vm0, %v40_v3  ;;  %v320_v14 = vld [vmem:[%s732_s6] sm:$0x3]  ;;  %v34_v17 = vld [vmem:[%s726_s0 + $0x38] sm:$0xff]  ;;  %v33_v18 = vld [vmem:[%s726_s0 + $0x30] sm:$0xff] }
   0xc   :  { %473 = vmatprep.subr.msk.mxu0 %vm71_vm0, %v39_v7  ;;  %v35_v16 = vld [vmem:[%s726_s0 + $0x40] sm:$0xff]  ;;  %v32_v19 = vld [vmem:[%s726_s0 + $0x28] sm:$0xff]  ;;  %v30_v21 = vld [vmem:[%s726_s0 + $0x18] sm:$0xff] }
   0xd   :  { %232 = vperm.xlu0 %527, %v224_v11   ;;  %227 = vperm.xlu1 %528, %v223_v12   ;;  %v31_v20 = vld [vmem:[%s726_s0 + $0x20] sm:$0xff]  ;;  %v29_v22 = vld [vmem:[%s726_s0 + $0x10] sm:$0xff]  ;;  %v28_v23 = vld [vmem:[%s726_s0 + $0x8] sm:$0xff] }
   0xe   :  { %v27_v24 = vld [vmem:[%s726_s0] sm:$0xff]  ;;  %v44_v25 = vld [vmem:[%s727_s1 + $0x8] sm:$0xff]  ;;  %v45_v26 = vld [vmem:[%s727_s1 + $0x10] sm:$0xff] }
   0xf   :  { %474 = vmatpush3.xpose.msk.msra.mxu0 %vm71_vm0, %v39_v7  ;;  %v46_v27 = vld [vmem:[%s727_s1 + $0x18] sm:$0xff]  ;;  %v221_v28 = vld [vmem:[%s729_s3] sm:$0xff]  ;;  %v222_v45 = vld [vmem:[%s729_s3 + $0x8] sm:$0xff]  ;;  %s554_s3 = smov [#allocation2]  }
  0x10   :  { %475 = vmatprep.subr.msk.mxu0 %vm71_vm0, %v38_v10  ;;  %513 = vmatprep.mubr.msk.f32.mxu1 %vm235_vm1, %v221_v28  ;;  %v319_v55 = vld [vmem:[%s731_s5] sm:$0x3]  ;;  %s407_s6 = sshll.u32 %s554_s3, 4  ;;  %s408_s6 = int_to_ptr.vmem [resolvable:$true] %s407_s6 }
  0x11   :  { %323 = vperm.xlu0 %527, %v320_v14   ;;  %s529_s8 = scalar_lea.vmem %s408_s6, 32  ;;  %p534_p1 = scmp.lt.s32.totalorder %s408_s6, %s408_s6 }
  0x12   :  { %p530_p0 = scmp.ne.s32.totalorder %s408_s6, %s529_s8  ;;  %p535_p2 = scmp.lt.s32.totalorder %s529_s8, %s529_s8 }
  0x13   :  { %476 = vmatpush3.xpose.msk.msra.mxu0 %vm71_vm0, %v38_v10 }
  0x14   :  { %477 = vmatprep.subr.msk.mxu0 %vm71_vm0, %v37_v13  ;;  %p536_p3 = por %p535_p2, %p534_p1 }
  0x16   :  { %p537_p4 = pnand %p536_p3, %p530_p0 }
  0x17   :  { %478 = vmatpush3.xpose.msk.msra.mxu0 %vm71_vm0, %v37_v13 }
  0x18   :  { %479 = vmatprep.subr.msk.mxu0 %vm71_vm0, %v36_v15 }
  0x1b   :  { %480 = vmatpush3.xpose.msk.msra.mxu0 %vm71_vm0, %v36_v15 }
  0x1c   :  { %481 = vmatprep.subr.msk.mxu0 %vm71_vm0, %v35_v16 }
  0x1f   :  { %482 = vmatpush3.xpose.msk.msra.mxu0 %vm71_vm0, %v35_v16 }
  0x20   :  { %483 = vmatprep.subr.msk.mxu0 %vm71_vm0, %v34_v17 }
  0x23   :  { %484 = vmatpush3.xpose.msk.msra.mxu0 %vm71_vm0, %v34_v17 }
  0x24   :  { %485 = vmatprep.subr.msk.mxu0 %vm71_vm0, %v33_v18 }
  0x27   :  { %486 = vmatpush3.xpose.msk.msra.mxu0 %vm71_vm0, %v33_v18 }
  0x28   :  { %487 = vmatprep.subr.msk.mxu0 %vm71_vm0, %v32_v19 }
  0x2b   :  { %488 = vmatpush3.xpose.msk.msra.mxu0 %vm71_vm0, %v32_v19 }
  0x2c   :  { %489 = vmatprep.subr.msk.mxu0 %vm71_vm0, %v31_v20 }
  0x2f   :  { %490 = vmatpush3.xpose.msk.msra.mxu0 %vm71_vm0, %v31_v20 }
  0x30   :  { %491 = vmatprep.subr.msk.mxu0 %vm71_vm0, %v30_v21 }
  0x33   :  { %492 = vmatpush3.xpose.msk.msra.mxu0 %vm71_vm0, %v30_v21 }
  0x34   :  { %493 = vmatprep.subr.msk.mxu0 %vm71_vm0, %v29_v22 }
  0x37   :  { %494 = vmatpush3.xpose.msk.msra.mxu0 %vm71_vm0, %v29_v22 }
  0x38   :  { %495 = vmatprep.subr.msk.mxu0 %vm71_vm0, %v28_v23 }
  0x3b   :  { %496 = vmatpush3.xpose.msk.msra.mxu0 %vm71_vm0, %v28_v23 }
  0x3c   :  { %497 = vmatprep.subr.msk.mxu0 %vm71_vm0, %v27_v24 }
  0x3f   :  { %498 = vmatpush3.xpose.msk.msra.mxu0 %vm71_vm0, %v27_v24 }
  0x42   :  { %500 = vmatmul.mubr.msk.f32.vlgmr.msra.gmra.mxu0 %vm71_vm0, %v44_v25 }
  0x43   :  { %502 = vmatprep.mubr.msk.f32.mxu0 %vm71_vm0, %v45_v26 }
  0x46   :  { %503 = vmatmul.mubr.msk.f32.gmra.mxu0 %vm71_vm0, %v46_v27 }
  0x7f   :  { %v69_v29 = vpop.permute.xlu0 %68 }
  0x80   :  { %v59_v30 = vpop.permute.xlu1 %58 }
  0x84   :  { %v64_v34 = vpop.permute.xlu0 %63  ;;  %v54_v36 = vpop.permute.xlu1 %53 }
  0x88   :  { %v233_v47 = vpop.permute.xlu0 %232  ;;  %v228_v50 = vpop.permute.xlu1 %227 }
  0x8c   :  { %v324_v56 = vpop.permute.xlu0 %323 }
 0x102   :  { %v501_v31 = vpop.f32.mrf.mxu0 }
 0x103   :  { %v204_v38 = vadd.f32 %v501_v31, %v59_v30 }
 0x104   :  { %v198_v32 = vpop.f32.mrf.mxu0 }
 0x105   :  { %v199_v41 = vadd.f32 %v198_v32, %v54_v36  ;;  %v218_v43 = vmax.f32 %v204_v38, 0.0 }
 0x106   :  { %v504_v33 = vpop.f32.mrf.mxu0 }
 0x107   :  { %v214_v35 = vadd.f32 %v504_v33, %v69_v29  ;;  %v217_v44 = vmax.f32 %v199_v41, 0.0 }
 0x108   :  { %v208_v37 = vpop.f32.mrf.mxu0 }
 0x109   :  { %v220_v39 = vmax.f32 %v214_v35, 0.0  ;;  %v209_v40 = vadd.f32 %v208_v37, %v64_v34 }
 0x10b   :  { %v219_v42 = vmax.f32 %v209_v40, 0.0  ;;  %505 = vmatprep.subr.mxu1 %v220_v39 }
 0x10c   :  { %506 = vmatpush3.msra.mxu1 %v220_v39 }
 0x10d   :  { %507 = vmatprep.subr.mxu1 %v219_v42 }
 0x10e   :  { %508 = vmatpush3.msra.mxu1 %v219_v42 }
 0x10f   :  { %509 = vmatprep.subr.mxu1 %v218_v43 }
 0x110   :  { %510 = vmatpush3.msra.mxu1 %v218_v43 }
 0x111   :  { %511 = vmatprep.subr.mxu1 %v217_v44 }
 0x112   :  { %512 = vmatpush3.msra.mxu1 %v217_v44 }
 0x113   :  { %514 = vmatmul.mubr.msk.f32.vlgmr.msra.gmra.mxu1 %vm235_vm1, %v222_v45  ;;  %516 = vmatprep.subr.mxu1 %v552_v46 }
 0x114   :  { %520 = vmatprep.mubr.msk.f32.mxu1 %vm553_vm2, %v552_v46 }
 0x1d3   :  { %v515_v48 = vpop.f32.mrf.mxu1 }
 0x1d4   :  { %v314_v49 = vadd.f32 %v515_v48, %v233_v47 }
 0x1d5   :  { %v308_v51 = vpop.f32.mrf.mxu1 }
 0x1d6   :  { %v318_v52 = vmax.f32 %v314_v49, 0.0  ;;  %v309_v53 = vadd.f32 %v308_v51, %v228_v50 }
 0x1d8   :  { %v317_v54 = vmax.f32 %v309_v53, 0.0  ;;  %517 = vmatpush3.msra.mxu1 %v318_v52 }
 0x1d9   :  { %518 = vmatprep.subr.mxu1 %v552_v46 }
 0x1da   :  { %519 = vmatpush3.msra.mxu1 %v317_v54 }
 0x1db   :  { %521 = vmatmul.mubr.msk.f32.vlgmr.msra.gmra.mxu1 %vm326_vm3, %v319_v55 }
 0x29b   :  { %v396_v57 = vpop.f32.mrf.mxu1 }
 0x29c   :  { %v397_v58 = vadd.f32 %v396_v57, %v324_v56 }
 0x29d   :  { %v522_v59 = vpop.f32.mrf.mxu1 }
 0x29e   :  { %400 = vst [vmem:[#allocation2] sm:$0x3] %v397_v58 }
 0x29f   :  { %540 = shalt.err (!%p537_p4)
}
 0x2a0   :  { %410 = dma.vmem_to_hbm [thread:$0]  %s408_s6, 32, %s733_s7, [#allocation3]  }
 0x2a1   :  { %549 = dma.done.wait [#allocation3], 32  }
 0x2a2   :  { %550 = vsyncadd [#allocation3], 4294967264 }
 0x2a3   :  { %414 = vsyncpa [#allocation3], 1 }

</bundles_post_ra>
